<compile_context>
chip_gen: v7x
topology: tpu7x:2x2x1
jax: 0.10.0
libtpu: 0.0.40
codegen_flags: <defaults>
</compile_context>

<pallas_src>
import functools

import numpy as np
import jax
import jax.numpy as jnp
from jax.experimental import pallas as pl
from jax.experimental.pallas import tpu as pltpu

LANE = 128
# Safe on v7x (64 MiB physical, ~48 usable) and well above the v5e/v6e scoped
# defaults; actual per-call usage here is only a few MiB.
VMEM_LIMIT = 48 * 1024 * 1024


# ----------------------------------------------------------------------------
# Small helpers
# ----------------------------------------------------------------------------
def _round_up(v, m):
    return ((v + m - 1) // m) * m


def _pad2d(x, rows, cols):
    return jnp.pad(x, ((0, rows - x.shape[0]), (0, cols - x.shape[1])))


def _pick_tiles(n_pad):
    """Row tile tm (prefer >= 2 row tiles for v7x 2-TC) and neighbor tile tk."""
    tm = None
    for t in (1024, 512, 256, 128):
        if n_pad % t == 0 and n_pad // t >= 2:
            tm = t
            break
    if tm is None:               # n_pad == 128: single row tile is unavoidable
        tm = 128
    tk = 128
    for t in (512, 256, 128):
        if n_pad % t == 0:
            tk = t
            break
    return tm, tk


# ----------------------------------------------------------------------------
# Pallas kernel 1: per-layer projection  XW = [X | pos] @ W
# ----------------------------------------------------------------------------
def _project_kernel(x_ref, w_ref, o_ref):
    o_ref[...] = jnp.dot(x_ref[...], w_ref[...],
                         preferred_element_type=jnp.float32).astype(o_ref.dtype)


def gcn_project(xcat, w, *, tn):
    n_pad, f_in = xcat.shape
    f_out = w.shape[1]
    return pl.pallas_call(
        _project_kernel,
        out_shape=jax.ShapeDtypeStruct((n_pad, f_out), jnp.bfloat16),
        grid=(n_pad // tn,),
        in_specs=[pl.BlockSpec((tn, f_in), lambda i: (i, 0)),
                  pl.BlockSpec((f_in, f_out), lambda i: (0, 0))],   # resident W
        out_specs=pl.BlockSpec((tn, f_out), lambda i: (i, 0)),
        compiler_params=pltpu.CompilerParams(
            dimension_semantics=("parallel",),
            vmem_limit_bytes=VMEM_LIMIT),
        cost_estimate=pl.CostEstimate(
            flops=2 * n_pad * f_in * f_out,
            transcendentals=0,
            bytes_accessed=2 * (n_pad * f_in + f_in * f_out + n_pad * f_out)),
    )(xcat, w)


# ----------------------------------------------------------------------------
# Pallas kernel 2: block-sparse aggregation  H = A_hat @ XW + b  (+ ReLU)
# ----------------------------------------------------------------------------
def _aggregate_kernel(blk_ref, val_ref, a_ref, xw_ref, b_ref, o_ref, acc_ref,
                      *, max_nnz, apply_relu):
    i = pl.program_id(0)
    kj = pl.program_id(1)

    @pl.when(kj == 0)
    def _init():
        acc_ref[...] = jnp.zeros_like(acc_ref)

    # Only accumulate for real (nonzero) neighbor-tile entries of this row tile.
    @pl.when(val_ref[i * max_nnz + kj] == 1)
    def _accumulate():
        acc_ref[...] += jnp.dot(a_ref[...], xw_ref[...],
                                preferred_element_type=jnp.float32)

    @pl.when(kj == pl.num_programs(1) - 1)
    def _finalize():
        h = acc_ref[...] + b_ref[...]          # bias (1, F_out) broadcasts
        if apply_relu:
            h = jnp.maximum(h, 0.0)
        o_ref[...] = h.astype(o_ref.dtype)


def gcn_aggregate(a_hat, xw, bias, blk_ids, blk_valid, max_nnz, nnz_blocks, *,
                  apply_relu, tm, tk, out_dtype):
    n_pad = a_hat.shape[0]
    f_out = xw.shape[1]
    kernel = functools.partial(_aggregate_kernel, max_nnz=max_nnz,
                               apply_relu=apply_relu)
    out_bytes = np.dtype(out_dtype).itemsize
    return pl.pallas_call(
        kernel,
        out_shape=jax.ShapeDtypeStruct((n_pad, f_out), out_dtype),
        grid_spec=pltpu.PrefetchScalarGridSpec(
            num_scalar_prefetch=2,
            grid=(n_pad // tm, max_nnz),
            in_specs=[
                # A_hat row-tile, data-dependent neighbor-tile column.
                pl.BlockSpec((tm, tk),
                             lambda i, kj, bref, vref:
                             (i, bref[i * max_nnz + kj])),
                # Matching XW neighbor tile.
                pl.BlockSpec((tk, f_out),
                             lambda i, kj, bref, vref:
                             (bref[i * max_nnz + kj], 0)),
                # Bias (resident).
                pl.BlockSpec((1, f_out), lambda i, kj, bref, vref: (0, 0)),
            ],
            out_specs=pl.BlockSpec((tm, f_out),
                                   lambda i, kj, bref, vref: (i, 0)),
            scratch_shapes=[pltpu.VMEM((tm, f_out), jnp.float32)]),
        compiler_params=pltpu.CompilerParams(
            dimension_semantics=("parallel", "arbitrary"),
            vmem_limit_bytes=VMEM_LIMIT),
        cost_estimate=pl.CostEstimate(
            flops=2 * nnz_blocks * tm * tk * f_out,
            transcendentals=0,
            bytes_accessed=nnz_blocks * (tm * tk * a_hat.dtype.itemsize
                                         + tk * f_out * xw.dtype.itemsize)
            + n_pad * f_out * out_bytes + f_out * 4),
    )(blk_ids, blk_valid, a_hat, xw, bias.reshape(1, f_out))


# ----------------------------------------------------------------------------
# Glue: adjacency, block-sparsity metadata, params, layer / forward
# ----------------------------------------------------------------------------
def build_norm_adj(edge_index, num_nodes):
    """Dense D^{-1/2}(A+I)D^{-1/2} (PyG gcn_norm, add_remaining_self_loops)."""
    src, dst = np.asarray(edge_index[0]), np.asarray(edge_index[1])
    a = np.zeros((num_nodes, num_nodes), np.float32)
    np.add.at(a, (dst, src), 1.0)                 # message flows src -> dst
    diag = np.diagonal(a).copy()
    idx = np.arange(num_nodes)
    a[idx, idx] += (diag <= 0).astype(np.float32)  # only missing self loops
    deg = a.sum(axis=1)
    dinv = np.where(deg > 0, 1.0 / np.sqrt(deg), 0.0).astype(np.float32)
    return dinv[:, None] * a * dinv[None, :]


def build_block_map(a_pad_np, tm, tk):
    """Block-CSR of nonzero (row-tile, neighbor-tile) pairs for scalar prefetch."""
    n_pad = a_pad_np.shape[0]
    n_rt, n_kt = n_pad // tm, n_pad // tk
    nz = a_pad_np.reshape(n_rt, tm, n_kt, tk).any(axis=(1, 3))   # (n_rt, n_kt)
    max_nnz = max(int(nz.sum(axis=1).max()), 1)
    blk = np.zeros((n_rt, max_nnz), np.int32)
    val = np.zeros((n_rt, max_nnz), np.int32)
    for i in range(n_rt):
        ks = np.flatnonzero(nz[i])
        blk[i, :ks.size] = ks
        val[i, :ks.size] = 1
        if ks.size:
            # Padding entries repeat the last valid block index: the pipeline
            # skips the duplicate DMA and pl.when skips the compute.
            blk[i, ks.size:] = ks[-1]
    nnz_blocks = int(val.sum())
    return (jnp.asarray(blk.reshape(-1)), jnp.asarray(val.reshape(-1)),
            max_nnz, nnz_blocks)


def glorot(key, fan_in, fan_out):
    lim = jnp.sqrt(6.0 / (fan_in + fan_out))
    return jax.random.uniform(key, (fan_in, fan_out), jnp.float32, -lim, lim)


def init_gcn_params(key, input_size, lookback, hidden_size, hidden_layers,
                    spatial_dimensions):
    """Fused [x | pos] weights, padded to 128 lanes, stored bf16 for the MXU."""
    fx_in = input_size * lookback + spatial_dimensions
    fh_in = hidden_size + spatial_dimensions
    h_pad = _round_up(hidden_size, LANE)
    out_pad = _round_up(input_size, LANE)
    keys = jax.random.split(key, hidden_layers + 1)

    def make(k, fan_in, fan_out, fan_out_pad):
        w = glorot(k, fan_in, fan_out)
        w_pad = _pad2d(w, _round_up(fan_in, LANE), fan_out_pad).astype(jnp.bfloat16)
        return w_pad, jnp.zeros((fan_out_pad,), jnp.float32)

    return {
        "in": make(keys[0], fx_in, hidden_size, h_pad),
        "hidden": [make(keys[1 + i], fh_in, hidden_size, h_pad)
                   for i in range(hidden_layers - 1)],
        "out": make(keys[-1], fh_in, input_size, out_pad),
    }


def _fuse_features(h, pos, h_cols, p_cols):
    """[h[:, :h_cols] | pos[:, :p_cols]] padded to a 128-lane bf16 operand."""
    cat = jnp.concatenate([h[:, :h_cols], pos[:, :p_cols]], axis=1)
    cat = cat.astype(jnp.bfloat16)
    return jnp.pad(cat, ((0, 0),
                         (0, _round_up(h_cols + p_cols, LANE) - cat.shape[1])))


def gcn_layer(a_hat, h, pos, w, b, sparsity, h_cols, p_cols, *,
              apply_relu, tm, tk, out_dtype):
    blk_ids, blk_valid, max_nnz, nnz_blocks = sparsity
    xcat = _fuse_features(h, pos, h_cols, p_cols)
    xw = gcn_project(xcat, w, tn=tm)                 # once per layer
    return gcn_aggregate(a_hat, xw, b, blk_ids, blk_valid, max_nnz, nnz_blocks,
                         apply_relu=apply_relu, tm=tm, tk=tk, out_dtype=out_dtype)


def gcn_forward(params, x_rp, pos_rp, a_hat_pad, sparsity, num_nodes,
                input_size, lookback, hidden_size, spatial_dimensions, tm, tk):
    """Mirrors GCN.forward: input layer -> ReLU -> hidden -> ReLU -> output."""
    fx = input_size * lookback
    p = spatial_dimensions
    w, b = params["in"]
    h = gcn_layer(a_hat_pad, x_rp, pos_rp, w, b, sparsity, fx, p,
                  apply_relu=True, tm=tm, tk=tk, out_dtype=jnp.bfloat16)
    for (w, b) in params["hidden"]:
        h = gcn_layer(a_hat_pad, h, pos_rp, w, b, sparsity, hidden_size, p,
                      apply_relu=True, tm=tm, tk=tk, out_dtype=jnp.bfloat16)
    w, b = params["out"]
    out = gcn_layer(a_hat_pad, h, pos_rp, w, b, sparsity, hidden_size, p,
                    apply_relu=False, tm=tm, tk=tk, out_dtype=jnp.float32)
    return out[:num_nodes, :input_size]


def gcn_reference(params, x_rp, pos_rp, a_f32_pad, num_nodes, input_size,
                  lookback, hidden_size, spatial_dimensions):
    """Plain-JAX f32 reference (same bf16 weights upcast) for a sanity check."""
    fx = input_size * lookback
    p = spatial_dimensions

    def fuse(h, cols):
        cat = jnp.concatenate([h[:, :cols], pos_rp[:, :p]], axis=1)
        cat = cat.astype(jnp.float32)
        return jnp.pad(cat, ((0, 0),
                             (0, _round_up(cols + p, LANE) - cat.shape[1])))

    def layer(h, cols, w, b, relu):
        z = a_f32_pad @ (fuse(h, cols) @ w.astype(jnp.float32)) + b[None, :]
        return jnp.maximum(z, 0.0) if relu else z

    w, b = params["in"]
    h = layer(x_rp, fx, w, b, True)
    for (w, b) in params["hidden"]:
        h = layer(h, hidden_size, w, b, True)
    w, b = params["out"]
    out = layer(h, hidden_size, w, b, False)
    return out[:num_nodes, :input_size]


# ----------------------------------------------------------------------------
if __name__ == "__main__":
    # Module hyperparameters (small, consistent with __init__)
    input_size = 4
    lookback = 2
    hidden_size = 32
    hidden_layers = 2            # -> one GCNConv in the hidden ModuleList
    spatial_dimensions = 2
    num_nodes = 16

    key = jax.random.PRNGKey(0)
    k_x, k_pos, k_params = jax.random.split(key, 3)

    # data.x : (N, input_size * lookback), data.pos : (N, 2)
    x = jax.random.normal(k_x, (num_nodes, input_size * lookback), jnp.float32)
    pos = jax.random.normal(k_pos, (num_nodes, spatial_dimensions), jnp.float32)

    # edge_index : (2, E) — undirected ring graph (both directions, no self loops)
    src = np.arange(num_nodes, dtype=np.int32)
    dst = (src + 1) % num_nodes
    edge_index = np.concatenate(
        [np.stack([src, dst]), np.stack([dst, src])], axis=1)

    # Dense normalized adjacency, padded to a 128-multiple.
    n_pad = _round_up(num_nodes, LANE)
    a_np = np.zeros((n_pad, n_pad), np.float32)
    a_np[:num_nodes, :num_nodes] = build_norm_adj(edge_index, num_nodes)

    tm, tk = _pick_tiles(n_pad)
    sparsity = build_block_map(a_np, tm, tk)     # block-CSR for scalar prefetch

    a_hat_pad = jnp.asarray(a_np, dtype=jnp.bfloat16)   # streamed operand: bf16
    a_f32_pad = jnp.asarray(a_np)                        # reference only
    x_rp = jnp.pad(x, ((0, n_pad - num_nodes), (0, 0)))
    pos_rp = jnp.pad(pos, ((0, n_pad - num_nodes), (0, 0)))

    params = init_gcn_params(k_params, input_size, lookback, hidden_size,
                             hidden_layers, spatial_dimensions)

    out = gcn_forward(params, x_rp, pos_rp, a_hat_pad, sparsity, num_nodes,
                      input_size, lookback, hidden_size, spatial_dimensions,
                      tm, tk)
    out = jax.block_until_ready(out)            # new data.x : (N, input_size)

    assert out.shape == (num_nodes, input_size)
    assert out.dtype == jnp.float32
    assert bool(jnp.all(jnp.isfinite(out)))

    # Relative-error check against the f32 reference (bf16 streams in kernel).
    ref = gcn_reference(params, x_rp, pos_rp, a_f32_pad, num_nodes, input_size,
                        lookback, hidden_size, spatial_dimensions)
    err = float(jnp.max(jnp.abs(out - ref)))
    denom = float(jnp.max(jnp.abs(ref)))
    assert err <= 3e-2 * denom + 1e-3, (err, denom)

    print("KERNEL_OK")
</pallas_src>

<mosaic_0001>
module attributes {stable_mosaic.version = 11 : i64} {
  func.func @_project_kernel(%arg0: i32, %arg1: memref<128x128xbf16, #tpu.memory_space<vmem>>, %arg2: memref<128x128xbf16, #tpu.memory_space<vmem>>, %arg3: memref<128x128xbf16, #tpu.memory_space<vmem>>) attributes {dimension_semantics = [#tpu.dimension_semantics<parallel>], iteration_bounds = array<i64: 1>, scalar_prefetch = 0 : i64, scratch_operands = 0 : i64, tpu.core_type = #tpu.core_type<tc>, window_params = [{transform_indices = @transform_0, window_bounds = array<i64: 128, 128>}, {pipeline_mode = #tpu.pipeline_mode<synchronous>, transform_indices = @transform_1, window_bounds = array<i64: 128, 128>}, {transform_indices = @transform_2, window_bounds = array<i64: 128, 128>}]} {
    %c0 = arith.constant 0 : index
    %c0_0 = arith.constant 0 : index
    %0 = vector.load %arg1[%c0, %c0_0] : memref<128x128xbf16, #tpu.memory_space<vmem>>, vector<128x128xbf16>
    %c0_1 = arith.constant 0 : index
    %c0_2 = arith.constant 0 : index
    %1 = vector.load %arg2[%c0_1, %c0_2] : memref<128x128xbf16, #tpu.memory_space<vmem>>, vector<128x128xbf16>
    %cst = arith.constant dense<0.000000e+00> : vector<128x128xf32>
    %2 = tpu.matmul %0, %1, %cst {dimension_numbers = #tpu.dot_dimension_numbers<[1], [0], [0], [1], [0, 0, 1, 1], [], []>} : vector<128x128xbf16>, vector<128x128xbf16>, vector<128x128xf32> -> vector<128x128xf32>
    %3 = arith.truncf %2 : vector<128x128xf32> to vector<128x128xbf16>
    %c0_3 = arith.constant 0 : index
    %c0_4 = arith.constant 0 : index
    %4 = vector.load %arg3[%c0_3, %c0_4] : memref<128x128xbf16, #tpu.memory_space<vmem>>, vector<128x128xbf16>
    tpu.vector_store %arg3[%c0_3, %c0_4], %3 {strides = array<i32>} : memref<128x128xbf16, #tpu.memory_space<vmem>>, vector<128x128xbf16>,
    return
  }
  func.func @transform_0(%arg0: i32) -> (i32, i32) {
    %c0_i32 = arith.constant 0 : i32
    %c0_i32_0 = arith.constant 0 : i32
    return %arg0, %c0_i32 : i32, i32
  }
  func.func @transform_1(%arg0: i32) -> (i32, i32) {
    %c0_i32 = arith.constant 0 : i32
    %c0_i32_0 = arith.constant 0 : i32
    %c0_i32_1 = arith.constant 0 : i32
    return %c0_i32, %c0_i32_0 : i32, i32
  }
  func.func @transform_2(%arg0: i32) -> (i32, i32) {
    %c0_i32 = arith.constant 0 : i32
    %c0_i32_0 = arith.constant 0 : i32
    return %arg0, %c0_i32 : i32, i32
  }
}

</mosaic_0001>

<bundles_post_ra>
// kernel: tpu_custom_call.1
= control target key start
LH: loop header
LB: loop body
LE: loop exit
PB: predicated region body
PF: predicated region fallthrough
CT: control target
= control target key end

     0   :  { %7 = vsyncpa [#allocation3], 0  ;;  %s681_s0 = inlined_call_operand.hbm [shape: bf16[128,128], index: 0, kind: input, shape index: {}]   ;;  %s682_s1 = inlined_call_operand.hbm [shape: bf16[128,128], index: 1, kind: input, shape index: {}]   ;;  %s683_s2 = inlined_call_operand.hbm [shape: bf16[128,128], index: 2, kind: output, shape index: {}]  }
   0x1   :  { %8 = vsyncpa [#allocation6], 0 }
   0x2   :  { %9 = vsyncpa [#allocation4], 0  ;;  %s616_s9 = smov [#allocation2]   ;;  %s544_s13 = scalar_lea.hbm %s681_s0, 1024 }
   0x3   :  { %s15_s10 = sshll.u32 %s616_s9, 4  ;;  %p545_p0 = scmp.ne.s32.totalorder %s681_s0, %s544_s13  ;;  %s16_s10 = int_to_ptr.vmem [resolvable:$true] %s15_s10 }
   0x4   :  { %p548_p1 = scmp.lt.u32.totalorder %s544_s13, %s681_s0 }
   0x6   :  { %p550_p2 = pnand %p548_p1, %p545_p0 }
   0x8   :  { %553 = shalt.err (!%p550_p2)
}
   0x9   :  { %s554_s18 = scalar_lea.vmem %s16_s10, 1024  ;;  %p559_p4 = scmp.lt.s32.totalorder %s16_s10, %s16_s10 }
   0xa   :  { %p555_p3 = scmp.ne.s32.totalorder %s16_s10, %s554_s18  ;;  %p560_p5 = scmp.lt.s32.totalorder %s554_s18, %s554_s18 }
   0xc   :  { %p561_p6 = por %p560_p5, %p559_p4 }
   0xe   :  { %p562_p7 = pnand %p561_p6, %p555_p3 }
  0x10   :  { %565 = shalt.err (!%p562_p7)
}
  0x11   :  { %s617_s19 = smov 64   ;;  %s618_s20 = smov 4  }
  0x12   :  { %21 = dma.hbm_to_vmem [thread:$0]  %s681_s0, 1024, %s16_s10, [#allocation3], %s617_s19, %s617_s19, %s618_s20  }
  0x13   :  { %s619_s23 = smov [#allocation5]   ;;  %s566_s27 = scalar_lea.hbm %s682_s1, 1024 }
  0x14   :  { %s27_s24 = sshll.u32 %s619_s23, 4  ;;  %p567_p8 = scmp.ne.s32.totalorder %s682_s1, %s566_s27  ;;  %s28_s24 = int_to_ptr.vmem [resolvable:$true] %s27_s24 }
  0x15   :  { %p570_p9 = scmp.lt.u32.totalorder %s566_s27, %s682_s1 }
  0x17   :  { %p572_p10 = pnand %p570_p9, %p567_p8 }
  0x19   :  { %575 = shalt.err (!%p572_p10)
}
  0x1a   :  { %s576_s4 = scalar_lea.vmem %s28_s24, 1024  ;;  %p581_p12 = scmp.lt.s32.totalorder %s28_s24, %s28_s24 }
  0x1b   :  { %p577_p11 = scmp.ne.s32.totalorder %s28_s24, %s576_s4  ;;  %p582_p13 = scmp.lt.s32.totalorder %s576_s4, %s576_s4 }
  0x1d   :  { %p583_p0 = por %p582_p13, %p581_p12 }
  0x1f   :  { %p584_p1 = pnand %p583_p0, %p577_p11 }
  0x21   :  { %587 = shalt.err (!%p584_p1)
}
  0x22   :  { %33 = dma.hbm_to_vmem [thread:$0]  %s682_s1, 1024, %s28_s24, [#allocation6], %s617_s19, %s617_s19, %s618_s20  }
  0x23   :  { %610 = dma.done.wait [#allocation3], 1024  }
  0x24   :  { %611 = vsyncadd [#allocation3], 4294966272 }
  0x25   :  { %612 = dma.done.wait [#allocation6], 1024  }
  0x26   :  { %613 = vsyncadd [#allocation6], 4294966272  ;;  %v528_v0 = vld [vmem:[#allocation5] sm:$0xff]   ;;  %v529_v1 = vld [vmem:[#allocation5 + $0x8] sm:$0xff]   ;;  %s620_s1 = smov [#allocation7]  }
  0x27   :  { %475 = vmatprep.subr.bf16.mxu0 %v528_v0  ;;  %507 = vmatprep.subr.bf16.mxu1 %v528_v0  ;;  %v530_v2 = vld [vmem:[#allocation5 + $0x10] sm:$0xff]   ;;  %v531_v3 = vld [vmem:[#allocation5 + $0x18] sm:$0xff]   ;;  %v536_v4 = vld [vmem:[#allocation2] sm:$0xff]   ;;  %s351_s6 = sshll.u32 %s620_s1, 4  ;;  %s352_s6 = int_to_ptr.vmem [resolvable:$true] %s351_s6 }
  0x28   :  { %476 = vmatpush3.bf16.msra.mxu0 %v528_v0  ;;  %515 = vmatpush3.bf16.msra.mxu1 %v528_v0  ;;  %v537_v5 = vld [vmem:[#allocation2 + $0x20] sm:$0xff]   ;;  %v533_v7 = vld [vmem:[#allocation5 + $0x28] sm:$0xff]   ;;  %v534_v8 = vld [vmem:[#allocation5 + $0x30] sm:$0xff]   ;;  %s588_s7 = scalar_lea.vmem %s352_s6, 1024  ;;  %p593_p3 = scmp.lt.s32.totalorder %s352_s6, %s352_s6 }
  0x29   :  { %477 = vmatprep.subr.bf16.mxu0 %v529_v1  ;;  %508 = vmatprep.subr.bf16.mxu1 %v529_v1  ;;  %v532_v6 = vld [vmem:[#allocation5 + $0x20] sm:$0xff]   ;;  %v535_v9 = vld [vmem:[#allocation5 + $0x38] sm:$0xff]   ;;  %v538_v10 = vld [vmem:[#allocation2 + $0x8] sm:$0xff]   ;;  %p589_p2 = scmp.ne.s32.totalorder %s352_s6, %s588_s7  ;;  %p594_p4 = scmp.lt.s32.totalorder %s588_s7, %s588_s7 }
  0x2a   :  { %491 = vmatprep.mubr.bf16.mxu0 %v536_v4  ;;  %499 = vmatprep.mubr.bf16.mxu1 %v537_v5  ;;  %v539_v11 = vld [vmem:[#allocation2 + $0x28] sm:$0xff]   ;;  %v540_v12 = vld [vmem:[#allocation2 + $0x10] sm:$0xff]   ;;  %v542_v14 = vld [vmem:[#allocation2 + $0x18] sm:$0xff]  }
  0x2b   :  { %v541_v13 = vld [vmem:[#allocation2 + $0x30] sm:$0xff]   ;;  %v543_v15 = vld [vmem:[#allocation2 + $0x38] sm:$0xff]   ;;  %p595_p5 = por %p594_p4, %p593_p3 }
  0x2c   :  { %478 = vmatpush3.bf16.msra.mxu0 %v529_v1  ;;  %516 = vmatpush3.bf16.msra.mxu1 %v529_v1 }
  0x2d   :  { %479 = vmatprep.subr.bf16.mxu0 %v530_v2  ;;  %509 = vmatprep.subr.bf16.mxu1 %v530_v2  ;;  %p596_p6 = pnand %p595_p5, %p589_p2 }
  0x30   :  { %480 = vmatpush3.bf16.msra.mxu0 %v530_v2  ;;  %517 = vmatpush3.bf16.msra.mxu1 %v530_v2 }
  0x31   :  { %481 = vmatprep.subr.bf16.mxu0 %v531_v3  ;;  %510 = vmatprep.subr.bf16.mxu1 %v531_v3 }
  0x34   :  { %482 = vmatpush3.bf16.msra.mxu0 %v531_v3  ;;  %518 = vmatpush3.bf16.msra.mxu1 %v531_v3 }
  0x35   :  { %483 = vmatprep.subr.bf16.mxu0 %v532_v6  ;;  %511 = vmatprep.subr.bf16.mxu1 %v532_v6 }
  0x38   :  { %484 = vmatpush3.bf16.msra.mxu0 %v532_v6  ;;  %519 = vmatpush3.bf16.msra.mxu1 %v532_v6 }
  0x39   :  { %485 = vmatprep.subr.bf16.mxu0 %v533_v7  ;;  %512 = vmatprep.subr.bf16.mxu1 %v533_v7 }
  0x3c   :  { %486 = vmatpush3.bf16.msra.mxu0 %v533_v7  ;;  %520 = vmatpush3.bf16.msra.mxu1 %v533_v7 }
  0x3d   :  { %487 = vmatprep.subr.bf16.mxu0 %v534_v8  ;;  %513 = vmatprep.subr.bf16.mxu1 %v534_v8 }
  0x40   :  { %488 = vmatpush3.bf16.msra.mxu0 %v534_v8  ;;  %521 = vmatpush3.bf16.msra.mxu1 %v534_v8 }
  0x41   :  { %489 = vmatprep.subr.bf16.mxu0 %v535_v9  ;;  %514 = vmatprep.subr.bf16.mxu1 %v535_v9 }
  0x44   :  { %490 = vmatpush3.bf16.msra.mxu0 %v535_v9  ;;  %522 = vmatpush3.bf16.msra.mxu1 %v535_v9 }
  0x47   :  { %492 = vmatmul.mubr.bf16.vlgmr.msra.gmra.mrb[0].mxu0 %v538_v10  ;;  %500 = vmatmul.mubr.bf16.vlgmr.msra.gmra.mrb[0].mxu1 %v539_v11 }
  0x48   :  { %495 = vmatprep.mubr.bf16.mxu0 %v540_v12  ;;  %503 = vmatprep.mubr.bf16.mxu1 %v541_v13 }
  0x4f   :  { %496 = vmatmul.mubr.bf16.gmra.mrb[4].mxu0 %v542_v14  ;;  %504 = vmatmul.mubr.bf16.gmra.mrb[4].mxu1 %v543_v15 }
 0x11a   :  { %v493_v16 = vpop.f32.mrb[0].mxu0  ;;  %v501_v17 = vpop.f32.mrb[0].mxu1 }
 0x11b   :  { %v203_v18 = vpop.f32.mrb[1].mxu0  ;;  %v235_v19 = vpop.f32.mrb[1].mxu1 }
 0x11c   :  { %v494_v20 = vpop.f32.mrb[2].mxu0  ;;  %v502_v21 = vpop.f32.mrb[2].mxu1 }
 0x11d   :  { %v420_v22 = vpack.c.bf16 %v494_v20, %v493_v16  ;;  %v440_v23 = vpack.c.bf16 %v502_v21, %v501_v17  ;;  %v206_v24 = vpop.f32.mrb[3].mxu0  ;;  %v238_v25 = vpop.f32.mrb[3].mxu1 }
 0x11e   :  { %v415_v26 = vpack.c.bf16 %v206_v24, %v203_v18  ;;  %v435_v27 = vpack.c.bf16 %v238_v25, %v235_v19 }
 0x11f   :  { %452 = vst [vmem:[#allocation7 + $0x8] sm:$0xff] %v420_v22   ;;  %456 = vst [vmem:[#allocation7 + $0x28] sm:$0xff] %v440_v23  }
 0x120   :  { %416 = vst [vmem:[#allocation7] sm:$0xff] %v415_v26   ;;  %455 = vst [vmem:[#allocation7 + $0x20] sm:$0xff] %v435_v27  }
 0x122   :  { %v497_v28 = vpop.f32.mrb[4].mxu0  ;;  %v505_v29 = vpop.f32.mrb[4].mxu1 }
 0x123   :  { %v219_v30 = vpop.f32.mrb[5].mxu0  ;;  %v251_v31 = vpop.f32.mrb[5].mxu1 }
 0x124   :  { %v498_v32 = vpop.f32.mrb[6].mxu0  ;;  %v506_v33 = vpop.f32.mrb[6].mxu1 }
 0x125   :  { %v430_v34 = vpack.c.bf16 %v498_v32, %v497_v28  ;;  %v450_v35 = vpack.c.bf16 %v506_v33, %v505_v29  ;;  %v222_v36 = vpop.f32.mrb[7].mxu0  ;;  %v254_v37 = vpop.f32.mrb[7].mxu1 }
 0x126   :  { %v425_v38 = vpack.c.bf16 %v222_v36, %v219_v30  ;;  %v445_v39 = vpack.c.bf16 %v254_v37, %v251_v31 }
 0x127   :  { %454 = vst [vmem:[#allocation7 + $0x18] sm:$0xff] %v430_v34   ;;  %458 = vst [vmem:[#allocation7 + $0x38] sm:$0xff] %v450_v35  }
 0x128   :  { %453 = vst [vmem:[#allocation7 + $0x10] sm:$0xff] %v425_v38   ;;  %457 = vst [vmem:[#allocation7 + $0x30] sm:$0xff] %v445_v39  }
 0x129   :  { %599 = shalt.err (!%p596_p6)
}
 0x12a   :  { %s600_s10 = scalar_lea.hbm %s683_s2, 1024 }
 0x12b   :  { %p601_p7 = scmp.ne.s32.totalorder %s683_s2, %s600_s10  ;;  %p604_p8 = scmp.lt.u32.totalorder %s600_s10, %s683_s2 }
 0x12d   :  { %p606_p9 = pnand %p604_p8, %p601_p7 }
 0x12f   :  { %609 = shalt.err (!%p606_p9)
}
 0x130   :  { %357 = dma.vmem_to_hbm [thread:$0]  %s352_s6, 1024, %s683_s2, [#allocation4], %s617_s19, %s617_s19, %s618_s20  }
 0x131   :  { %614 = dma.done.wait [#allocation4], 1024  }
 0x132   :  { %615 = vsyncadd [#allocation4], 4294966272 }
 0x133   :  { %361 = vsyncpa [#allocation3], 1 }
 0x134   :  { %362 = vsyncpa [#allocation6], 1 }
 0x135   :  { %363 = vsyncpa [#allocation4], 1 }

</bundles_post_ra>
